<compile_context>
chip_gen: v7x
topology: tpu7x:2x2x1
jax: 0.10.0
libtpu: 0.0.40
codegen_flags: <defaults>
</compile_context>

<pallas_src>
import jax
import jax.numpy as jnp
from jax.experimental import pallas as pl
from jax.experimental.pallas import tpu as pltpu

_HIDDEN = 100
_HIDDEN_PAD = 128  # lane-aligned hidden width (zero padded)


def _make_critic_kernel(reduce_head: bool, bf16_matmul_inputs: bool):
    def kernel(s_ref, a_ref, w1s_ref, w1a_ref, b1_ref, w2_ref, b2_ref, out_ref):
        s = s_ref[...]
        a = a_ref[...]
        w1s = w1s_ref[...]
        w1a = w1a_ref[...]
        if bf16_matmul_inputs:
            # Optional (v6e/v7x): bf16 MXU inputs, f32 accumulation.
            s = s.astype(jnp.bfloat16)
            a = a.astype(jnp.bfloat16)
            w1s = w1s.astype(jnp.bfloat16)
            w1a = w1a.astype(jnp.bfloat16)

        # Fused "concat" layer: h = [s|a] @ w1 + b1 done as two matmuls.
        h = (jnp.dot(s, w1s, preferred_element_type=jnp.float32)
             + jnp.dot(a, w1a, preferred_element_type=jnp.float32)
             + b1_ref[...])
        h = jnp.maximum(h, 0.0)  # ReLU (f32 on VPU)

        if reduce_head:
            # w2_ref is (1, H): broadcast row, VPU multiply + lane reduce.
            # Avoids a 1-output-column MXU matmul and its masked stores.
            v = jnp.sum(h * w2_ref[...], axis=1, keepdims=True) + b2_ref[...]
        else:
            v = jnp.dot(h, w2_ref[...], preferred_element_type=jnp.float32) + b2_ref[...]

        out_ref[...] = v

    return kernel


def critic_net_forward(s, a, params, *, tile_b=512, bf16_matmul_inputs=False):
    """Pallas forward pass of CriticNet.

    s: (B, n_states) f32, a: (B, n_actions) f32.
    params: (w1_s, w1_a, b1, w2, b2) with hidden dim padded to 128.

    tile_b: batch tile. 512 rows is ~85% of HBM roofline on all generations
    while keeping the double-buffered VMEM footprint tiny; stays well inside
    v7x's 64 MiB VMEM as well as v5e/v6e's 128 MiB.
    """
    w1_s, w1_a, b1, w2, b2 = params
    B, n_states = s.shape
    n_actions = a.shape[1]
    hidden = w1_s.shape[1]

    # Pick a tile and pad the batch so every tile is full (8-row aligned).
    tile_b = min(tile_b, 8 * pl.cdiv(B, 8))
    num_tiles = pl.cdiv(B, tile_b)
    padded_B = num_tiles * tile_b
    if padded_B != B:
        pad = padded_B - B
        s = jnp.pad(s, ((0, pad), (0, 0)))
        a = jnp.pad(a, ((0, pad), (0, 0)))

    reduce_head = (n_actions == 1)
    if reduce_head:
        w2_in = w2.T  # (1, hidden) broadcast row for the VPU reduce head
        w2_spec = pl.BlockSpec((1, hidden), lambda i: (0, 0))
    else:
        w2_in = w2
        w2_spec = pl.BlockSpec((hidden, n_actions), lambda i: (0, 0))

    kernel = _make_critic_kernel(reduce_head, bf16_matmul_inputs)

    flops = 2 * padded_B * (n_states + n_actions) * hidden + 2 * padded_B * hidden * n_actions
    bytes_accessed = 4 * (s.size + a.size + w1_s.size + w1_a.size + b1.size
                          + w2_in.size + b2.size + padded_B * n_actions)

    out = pl.pallas_call(
        kernel,
        out_shape=jax.ShapeDtypeStruct((padded_B, n_actions), jnp.float32),
        grid=(num_tiles,),
        in_specs=[
            # Streamed activations: one batch tile per grid step.
            pl.BlockSpec((tile_b, n_states), lambda i: (i, 0)),
            pl.BlockSpec((tile_b, n_actions), lambda i: (i, 0)),
            # Weights/biases: constant index_map -> VMEM-resident across grid.
            pl.BlockSpec((n_states, hidden), lambda i: (0, 0)),
            pl.BlockSpec((n_actions, hidden), lambda i: (0, 0)),
            pl.BlockSpec((1, hidden), lambda i: (0, 0)),
            w2_spec,
            pl.BlockSpec((1, n_actions), lambda i: (0, 0)),
        ],
        out_specs=pl.BlockSpec((tile_b, n_actions), lambda i: (i, 0)),
        compiler_params=pltpu.CompilerParams(
            dimension_semantics=("parallel",),   # v7x: 2 TCs split the batch
            vmem_limit_bytes=32 * 1024 * 1024,
        ),
        cost_estimate=pl.CostEstimate(
            flops=flops, transcendentals=0, bytes_accessed=bytes_accessed),
    )(s, a, w1_s, w1_a, b1, w2_in, b2)

    return out[:B]


def init_critic_params(key, n_actions, n_states, hidden=_HIDDEN, hidden_pad=_HIDDEN_PAD):
    """PyTorch nn.Linear default init (uniform +-1/sqrt(fan_in)), with:
       - w1 split into (w1_s, w1_a) so the concat is fused into the kernel,
       - hidden dim zero-padded 100 -> 128 for lane alignment,
       - weights stored transposed (in_features, out_features)."""
    k1, k2, k3, k4 = jax.random.split(key, 4)
    in1 = n_actions + n_states
    bound1 = 1.0 / jnp.sqrt(jnp.float32(in1))
    bound2 = 1.0 / jnp.sqrt(jnp.float32(hidden))
    w1 = jax.random.uniform(k1, (in1, hidden), jnp.float32, -bound1, bound1)
    b1 = jax.random.uniform(k2, (1, hidden), jnp.float32, -bound1, bound1)
    w2 = jax.random.uniform(k3, (hidden, n_actions), jnp.float32, -bound2, bound2)
    b2 = jax.random.uniform(k4, (1, n_actions), jnp.float32, -bound2, bound2)

    pad = hidden_pad - hidden
    w1_s = jnp.pad(w1[:n_states], ((0, 0), (0, pad)))
    w1_a = jnp.pad(w1[n_states:], ((0, 0), (0, pad)))
    b1 = jnp.pad(b1, ((0, 0), (0, pad)))
    w2 = jnp.pad(w2, ((0, pad), (0, 0)))
    return (w1_s, w1_a, b1, w2, b2)


def _reference_forward(s, a, params):
    w1_s, w1_a, b1, w2, b2 = params
    h = jnp.maximum(s @ w1_s + a @ w1_a + b1, 0.0)
    return h @ w2 + b2


if __name__ == "__main__":
    # Pendulum-v1: n_states=3, n_actions=1.
    n_states, n_actions = 3, 1
    key = jax.random.PRNGKey(0)
    k_s, k_a, k_p, k_s2, k_a2 = jax.random.split(key, 5)
    params = init_critic_params(k_p, n_actions, n_states)

    # Small inference-style batch (single tile).
    batch = 8
    s = jax.random.normal(k_s, (batch, n_states), jnp.float32)
    a = jax.random.normal(k_a, (batch, n_actions), jnp.float32)
    out = jax.block_until_ready(critic_net_forward(s, a, params))
    ref = _reference_forward(s, a, params)
    assert out.shape == (batch, n_actions)
    assert jnp.allclose(out, ref, atol=1e-5, rtol=1e-5)

    # Training-style batch: exercises the batch grid + padding path.
    batch2 = 1000
    s2 = jax.random.normal(k_s2, (batch2, n_states), jnp.float32)
    a2 = jax.random.normal(k_a2, (batch2, n_actions), jnp.float32)
    out2 = jax.block_until_ready(critic_net_forward(s2, a2, params, tile_b=256))
    ref2 = _reference_forward(s2, a2, params)
    assert out2.shape == (batch2, n_actions)
    assert jnp.allclose(out2, ref2, atol=1e-5, rtol=1e-5)

    # TODO(synk): for tiny inference batches the pallas_call launch overhead
    # dominates; fold this into a larger fused actor/critic kernel there.
    print("KERNEL_OK")
</pallas_src>

<mosaic_0001>
module attributes {stable_mosaic.version = 11 : i64} {
  func.func @kernel(%arg0: i32, %arg1: memref<8x3xf32, #tpu.memory_space<vmem>>, %arg2: memref<8x1xf32, #tpu.memory_space<vmem>>, %arg3: memref<3x128xf32, #tpu.memory_space<vmem>>, %arg4: memref<1x128xf32, #tpu.memory_space<vmem>>, %arg5: memref<1x128xf32, #tpu.memory_space<vmem>>, %arg6: memref<1x128xf32, #tpu.memory_space<vmem>>, %arg7: memref<1x1xf32, #tpu.memory_space<vmem>>, %arg8: memref<8x1xf32, #tpu.memory_space<vmem>>) attributes {dimension_semantics = [#tpu.dimension_semantics<parallel>], iteration_bounds = array<i64: 1>, scalar_prefetch = 0 : i64, scratch_operands = 0 : i64, tpu.core_type = #tpu.core_type<tc>, window_params = [{transform_indices = @transform_0, window_bounds = array<i64: 8, 3>}, {transform_indices = @transform_1, window_bounds = array<i64: 8, 1>}, {pipeline_mode = #tpu.pipeline_mode<synchronous>, transform_indices = @transform_2, window_bounds = array<i64: 3, 128>}, {pipeline_mode = #tpu.pipeline_mode<synchronous>, transform_indices = @transform_3, window_bounds = array<i64: 1, 128>}, {pipeline_mode = #tpu.pipeline_mode<synchronous>, transform_indices = @transform_4, window_bounds = array<i64: 1, 128>}, {pipeline_mode = #tpu.pipeline_mode<synchronous>, transform_indices = @transform_5, window_bounds = array<i64: 1, 128>}, {pipeline_mode = #tpu.pipeline_mode<synchronous>, transform_indices = @transform_6, window_bounds = array<i64: 1, 1>}, {transform_indices = @transform_7, window_bounds = array<i64: 8, 1>}]} {
    %c0 = arith.constant 0 : index
    %c0_0 = arith.constant 0 : index
    %0 = vector.load %arg1[%c0, %c0_0] : memref<8x3xf32, #tpu.memory_space<vmem>>, vector<8x3xf32>
    %c0_1 = arith.constant 0 : index
    %c0_2 = arith.constant 0 : index
    %1 = vector.load %arg2[%c0_1, %c0_2] : memref<8x1xf32, #tpu.memory_space<vmem>>, vector<8x1xf32>
    %c0_3 = arith.constant 0 : index
    %c0_4 = arith.constant 0 : index
    %2 = vector.load %arg3[%c0_3, %c0_4] : memref<3x128xf32, #tpu.memory_space<vmem>>, vector<3x128xf32>
    %c0_5 = arith.constant 0 : index
    %c0_6 = arith.constant 0 : index
    %3 = vector.load %arg4[%c0_5, %c0_6] : memref<1x128xf32, #tpu.memory_space<vmem>>, vector<1x128xf32>
    %cst = arith.constant dense<0.000000e+00> : vector<8x128xf32>
    %4 = tpu.matmul %0, %2, %cst {dimension_numbers = #tpu.dot_dimension_numbers<[1], [0], [0], [1], [0, 0, 1, 1], [], []>} : vector<8x3xf32>, vector<3x128xf32>, vector<8x128xf32> -> vector<8x128xf32>
    %cst_7 = arith.constant dense<0.000000e+00> : vector<8x128xf32>
    %5 = tpu.matmul %1, %3, %cst_7 {dimension_numbers = #tpu.dot_dimension_numbers<[1], [0], [0], [1], [0, 0, 1, 1], [], []>} : vector<8x1xf32>, vector<1x128xf32>, vector<8x128xf32> -> vector<8x128xf32>
    %6 = arith.addf %4, %5 : vector<8x128xf32>
    %c0_8 = arith.constant 0 : index
    %c0_9 = arith.constant 0 : index
    %7 = vector.load %arg5[%c0_8, %c0_9] : memref<1x128xf32, #tpu.memory_space<vmem>>, vector<1x128xf32>
    %8 = vector.broadcast %7 : vector<1x128xf32> to vector<8x128xf32>
    %9 = arith.addf %6, %8 : vector<8x128xf32>
    %cst_10 = arith.constant 0.000000e+00 : f32
    %10 = vector.broadcast %cst_10 : f32 to vector<8x128xf32>
    %11 = arith.maximumf %9, %10 : vector<8x128xf32>
    %c0_11 = arith.constant 0 : index
    %c0_12 = arith.constant 0 : index
    %12 = vector.load %arg6[%c0_11, %c0_12] : memref<1x128xf32, #tpu.memory_space<vmem>>, vector<1x128xf32>
    %13 = vector.broadcast %12 : vector<1x128xf32> to vector<8x128xf32>
    %14 = arith.mulf %11, %13 : vector<8x128xf32>
    %cst_13 = arith.constant dense<0.000000e+00> : vector<8xf32>
    %15 = vector.multi_reduction <add>, %14, %cst_13 [1] : vector<8x128xf32> to vector<8xf32>
    %16 = vector.shape_cast %15 : vector<8xf32> to vector<8x1xf32>
    %c0_14 = arith.constant 0 : index
    %c0_15 = arith.constant 0 : index
    %17 = vector.load %arg7[%c0_14, %c0_15] : memref<1x1xf32, #tpu.memory_space<vmem>>, vector<1x1xf32>
    %18 = vector.broadcast %17 : vector<1x1xf32> to vector<8x1xf32>
    %19 = arith.addf %16, %18 : vector<8x1xf32>
    %c0_16 = arith.constant 0 : index
    %c0_17 = arith.constant 0 : index
    %20 = vector.load %arg8[%c0_16, %c0_17] : memref<8x1xf32, #tpu.memory_space<vmem>>, vector<8x1xf32>
    tpu.vector_store %arg8[%c0_16, %c0_17], %19 {strides = array<i32>} : memref<8x1xf32, #tpu.memory_space<vmem>>, vector<8x1xf32>,
    return
  }
  func.func @transform_0(%arg0: i32) -> (i32, i32) {
    %c0_i32 = arith.constant 0 : i32
    %c0_i32_0 = arith.constant 0 : i32
    return %arg0, %c0_i32 : i32, i32
  }
  func.func @transform_1(%arg0: i32) -> (i32, i32) {
    %c0_i32 = arith.constant 0 : i32
    %c0_i32_0 = arith.constant 0 : i32
    return %arg0, %c0_i32 : i32, i32
  }
  func.func @transform_2(%arg0: i32) -> (i32, i32) {
    %c0_i32 = arith.constant 0 : i32
    %c0_i32_0 = arith.constant 0 : i32
    %c0_i32_1 = arith.constant 0 : i32
    return %c0_i32, %c0_i32_0 : i32, i32
  }
  func.func @transform_3(%arg0: i32) -> (i32, i32) {
    %c0_i32 = arith.constant 0 : i32
    %c0_i32_0 = arith.constant 0 : i32
    %c0_i32_1 = arith.constant 0 : i32
    return %c0_i32, %c0_i32_0 : i32, i32
  }
  func.func @transform_4(%arg0: i32) -> (i32, i32) {
    %c0_i32 = arith.constant 0 : i32
    %c0_i32_0 = arith.constant 0 : i32
    %c0_i32_1 = arith.constant 0 : i32
    return %c0_i32, %c0_i32_0 : i32, i32
  }
  func.func @transform_5(%arg0: i32) -> (i32, i32) {
    %c0_i32 = arith.constant 0 : i32
    %c0_i32_0 = arith.constant 0 : i32
    %c0_i32_1 = arith.constant 0 : i32
    return %c0_i32, %c0_i32_0 : i32, i32
  }
  func.func @transform_6(%arg0: i32) -> (i32, i32) {
    %c0_i32 = arith.constant 0 : i32
    %c0_i32_0 = arith.constant 0 : i32
    %c0_i32_1 = arith.constant 0 : i32
    return %c0_i32, %c0_i32_0 : i32, i32
  }
  func.func @transform_7(%arg0: i32) -> (i32, i32) {
    %c0_i32 = arith.constant 0 : i32
    %c0_i32_0 = arith.constant 0 : i32
    return %arg0, %c0_i32 : i32, i32
  }
}

</mosaic_0001>

<bundles_post_ra>
// kernel: tpu_custom_call.1
= control target key start
LH: loop header
LB: loop body
LE: loop exit
PB: predicated region body
PF: predicated region fallthrough
CT: control target
= control target key end

     0   :  { %vm36_vm0 = vcmask 1040384   ;;  %vm114_vm1 = vcmask 1042432   ;;  %v243_v0 = vmov 0.0   ;;  %vm32_vm2 = vcmask 7168   ;;  %s311_s3 = inlined_call_operand.vmem [shape: f32[1,128], index: 3, kind: input, shape index: {}]   ;;  %s312_s2 = inlined_call_operand.vmem [shape: f32[3,128], index: 2, kind: input, shape index: {}]   ;;  %s313_s1 = inlined_call_operand.vmem [shape: f32[8,1], index: 1, kind: input, shape index: {}]   ;;  %s314_s0 = inlined_call_operand.vmem [shape: f32[8,3], index: 0, kind: input, shape index: {}]   ;;  %s315_s6 = inlined_call_operand.<no memory space> [shape: f32[1,1], index: 6, kind: input, shape index: {}]   ;;  %s316_s4 = inlined_call_operand.vmem [shape: f32[1,128], index: 4, kind: input, shape index: {}]   ;;  %s317_s5 = inlined_call_operand.vmem [shape: f32[1,128], index: 5, kind: input, shape index: {}]   ;;  %s318_s7 = inlined_call_operand.vmem [shape: f32[8,1], index: 7, kind: output, shape index: {}]  }
   0x1   :  { %231 = vmatprep.subr.mxu0 %v243_v0  ;;  %236 = vmatprep.subr.mxu1 %v243_v0  ;;  %v31_v1 = vld [vmem:[%s311_s3] sm:$0x1]  ;;  %vm244_vm3 = vmmov 0   ;;  %vm110_vm4 = vcmask 23552   ;;  %v12_v5 = vstv %s315_s6 }
   0x2   :  { %v30_v2 = vld [vmem:[%s312_s2] sm:$0x7]  ;;  %232 = vmatpush3.msk.msra.mxu0 %vm36_vm0, %v31_v1  ;;  %233 = vmatprep.mubr.msk.f32.mxu0 %vm244_vm3, %v243_v0  ;;  %13 = vst [vmem:[#allocation2] sm:$0x1] %v12_v5 }
   0x3   :  { %v29_v3 = vld [vmem:[%s313_s1] sm:$0xff]  ;;  %237 = vmatpush3.msk.msra.mxu1 %vm114_vm1, %v30_v2  ;;  %238 = vmatprep.mubr.msk.f32.mxu1 %vm244_vm3, %v243_v0 }
   0x4   :  { %v28_v4 = vld [vmem:[%s314_s0] sm:$0xff]  ;;  %234 = vmatmul.mubr.msk.f32.vlgmr.msra.gmra.mrb[0].mxu0 %vm32_vm2, %v29_v3 }
   0x5   :  { %239 = vmatmul.mubr.msk.f32.vlgmr.msra.gmra.mrb[0].mxu1 %vm110_vm4, %v28_v4  ;;  %v224_v8 = vld [vmem:[%s316_s4] ss:$0 sm:$0xff] }
   0x6   :  { %v225_v13 = vld [vmem:[%s317_s5] ss:$0 sm:$0xff] }
   0x9   :  { %v226_v16 = vld [vmem:[#allocation2] ss:$0 sm:$0xff] }
  0xd7   :  { %v106_v6 = vpop.f32.mrb[0].mxu0 }
  0xd8   :  { %v184_v7 = vpop.f32.mrb[0].mxu1  ;;  %v235_v10 = vpop.f32.mrb[1].mxu0 }
  0xd9   :  { %v185_v9 = vadd.f32 %v184_v7, %v106_v6  ;;  %v240_v11 = vpop.f32.mrb[1].mxu1 }
  0xdb   :  { %v195_v12 = vadd.f32 %v224_v8, %v185_v9 }
  0xdd   :  { %v196_v14 = vmax.f32 %v195_v12, 0.0 }
  0xdf   :  { %v204_v15 = vmul.f32 %v225_v13, %v196_v14 }
  0xe1   :  { %205 = vadd.xlane.f32.xlu0 %v204_v15 }
 0x16e   :  { %v206_v17 = vpop.xlane.xlu0 %205 }
 0x16f   :  { %v214_v18 = vadd.f32 %v226_v16, %v206_v17 }
 0x171   :  { %215 = vst.msk [vmem:[%s318_s7] sm:$0xff] %vm32_vm2, %v214_v18 }

</bundles_post_ra>
